<compile_context>
chip_gen: v6e
topology: v6e:2x2x1
jax: 0.10.0
libtpu: 0.0.40
codegen_flags: <defaults>
</compile_context>

<pallas_src>
import jax
import jax.numpy as jnp
from jax.experimental import pallas as pl
from jax.experimental.pallas import tpu as pltpu

LEAKY_SLOPE = 0.1
TAU = 0.04


# --------------------------------------------------------------------------
# Fused kernel: one grid step == one discriminator; writes its own (1,1) loss.
# --------------------------------------------------------------------------
def _generator_loss_kernel(x_ref, w1_ref, b1_ref, w2_ref, b2_ref,
                           w3_ref, b3_ref, o_ref):
    two_m, _ = x_ref.shape
    m = two_m // 2
    hidden = w1_ref.shape[1]

    # ---- fused 3-layer discriminator forward (real & gen rows batched) -----
    # bf16 MXU inputs, f32 accumulation; all loss math in f32.
    x = x_ref[...]                                                    # (2M,F) bf16
    h1 = jnp.dot(x, w1_ref[...], preferred_element_type=jnp.float32) + b1_ref[...]
    h1 = jnp.where(h1 >= 0.0, h1, LEAKY_SLOPE * h1)                   # (2M,H) f32
    h2 = jnp.dot(h1.astype(jnp.bfloat16), w2_ref[...],
                 preferred_element_type=jnp.float32) + b2_ref[...]
    h2 = jnp.where(h2 >= 0.0, h2, LEAKY_SLOPE * h2)                   # (2M,H) f32
    # hidden -> 1 head: lane-dense weight row + lane reduction (no (.,1) matmul)
    score = jnp.sum(h2 * w3_ref[...], axis=1, keepdims=True) + b3_ref[...]  # (2M,1)

    # m is sublane-aligned (asserted in the wrapper) so these slices are free.
    h1_r, h1_g = h1[:m, :], h1[m:, :]
    h2_r, h2_g = h2[:m, :], h2[m:, :]
    s_r, s_g = score[:m, :], score[m:, :]

    # ---- feature-matching L1 (x2); divisor folded as a constant multiply ----
    inv_feat = 2.0 / float(m * hidden)
    feat = (jnp.sum(jnp.abs(h1_r - h1_g), keepdims=True)
            + jnp.sum(jnp.abs(h2_r - h2_g), keepdims=True)) * inv_feat      # (1,1)

    # ---- LSGAN generator term: mean((1 - gen_score)^2) ----------------------
    gen_term = jnp.sum((1.0 - s_g) ** 2, keepdims=True) * (1.0 / float(m))  # (1,1)

    # ---- TPRLS term ----------------------------------------------------------
    # d = gen_score - real_score (matches the reference's swapped dr/dg naming)
    d_col = s_g - s_r                                                       # (M,1)
    d_row = jnp.transpose(d_col)                                            # (1,M) XLU

    # torch lower-median via rank selection (single < / <= pass).
    # Counts accumulate in f32 -> exact while M < 2^24.
    # TODO(synk): tile this O(M^2) compare (or two-phase the median) for large M.
    cnt_less = jnp.sum((d_col < d_row).astype(jnp.float32), axis=0, keepdims=True)
    cnt_le = jnp.sum((d_col <= d_row).astype(jnp.float32), axis=0, keepdims=True)
    k = jnp.float32((m - 1) // 2)
    is_med = jnp.logical_and(cnt_less <= k, cnt_le > k)                     # (1,M)
    m_dg = jnp.max(jnp.where(is_med, d_row, jnp.float32(-jnp.inf)),
                   keepdims=True)                                           # (1,1)

    mask = d_row < m_dg
    num = jnp.sum(jnp.where(mask, (d_row - m_dg) ** 2, 0.0), keepdims=True)
    cnt = jnp.sum(mask.astype(jnp.float32), keepdims=True)
    l_rel = num / jnp.maximum(cnt, 1.0)          # exact scalar divide
    tprls = TAU - jnp.maximum(TAU - l_rel, 0.0)

    o_ref[...] = feat + gen_term + tprls


# --------------------------------------------------------------------------
# Wrapper: frame audio, concat real+gen rows, ONE pallas_call, sum per-disc.
# --------------------------------------------------------------------------
def generator_loss_helper_forward(disc_params, audio_gt, audio, frame):
    b, _, t = audio_gt.shape
    m = b * (t // frame)
    # real/gen split point must be f32-sublane aligned so in-kernel row slices
    # at m are layout-free (leading size-2 axis would be the alternative).
    assert m % 8 == 0, "frame count must be a multiple of 8"

    x = jnp.concatenate(
        [audio_gt.reshape(m, frame), audio.reshape(m, frame)], axis=0
    ).astype(jnp.bfloat16)                                             # (2M, F)

    n_disc, _, hidden = disc_params["w1"].shape
    w1 = disc_params["w1"].astype(jnp.bfloat16)
    w2 = disc_params["w2"].astype(jnp.bfloat16)

    per_disc = pl.pallas_call(
        _generator_loss_kernel,
        out_shape=jax.ShapeDtypeStruct((n_disc, 1, 1), jnp.float32),
        grid_spec=pltpu.PrefetchScalarGridSpec(
            num_scalar_prefetch=0,
            grid=(n_disc,),
            in_specs=[
                # x is grid-invariant: single-buffer it (no pointless 2x VMEM).
                pl.BlockSpec((2 * m, frame), lambda d: (0, 0),
                             pipeline_mode=pl.Buffered(1)),
                pl.BlockSpec((None, frame, hidden), lambda d: (d, 0, 0)),
                pl.BlockSpec((None, 1, hidden), lambda d: (d, 0, 0)),
                pl.BlockSpec((None, hidden, hidden), lambda d: (d, 0, 0)),
                pl.BlockSpec((None, 1, hidden), lambda d: (d, 0, 0)),
                pl.BlockSpec((None, 1, hidden), lambda d: (d, 0, 0)),
                pl.BlockSpec((None, 1, 1), lambda d: (d, 0, 0)),
            ],
            out_specs=pl.BlockSpec((None, 1, 1), lambda d: (d, 0, 0)),
        ),
        compiler_params=pltpu.CompilerParams(
            # discriminators are independent -> v7x's two TCs can split the grid
            dimension_semantics=("parallel",),
            vmem_limit_bytes=48 * 1024 * 1024,
        ),
    )(x, w1, disc_params["b1"], w2, disc_params["b2"],
      disc_params["w3"], disc_params["b3"])
    return jnp.sum(per_disc)


# --------------------------------------------------------------------------
# Synthetic discriminator parameters (stand-in for the external `model`)
# --------------------------------------------------------------------------
def make_stacked_disc_params(key, n_disc, frame, hidden):
    ks = jax.random.split(key, 6)
    return {
        "w1": 0.2 * jax.random.normal(ks[0], (n_disc, frame, hidden), jnp.float32),
        "b1": 0.1 * jax.random.normal(ks[1], (n_disc, 1, hidden), jnp.float32),
        "w2": 0.2 * jax.random.normal(ks[2], (n_disc, hidden, hidden), jnp.float32),
        "b2": 0.1 * jax.random.normal(ks[3], (n_disc, 1, hidden), jnp.float32),
        "w3": 0.2 * jax.random.normal(ks[4], (n_disc, 1, hidden), jnp.float32),
        "b3": 0.1 * jax.random.normal(ks[5], (n_disc, 1, 1), jnp.float32),
    }


# --------------------------------------------------------------------------
# Pure-JAX reference (torch semantics: lower median, masked mean, relu clamp).
# Uses the same bf16-input / f32-accumulate matmul precision as the kernel.
# --------------------------------------------------------------------------
def reference_forward(disc_params, audio_gt, audio, frame):
    b, _, t = audio_gt.shape
    m = b * (t // frame)
    xr = audio_gt.reshape(m, frame).astype(jnp.bfloat16)
    xg = audio.reshape(m, frame).astype(jnp.bfloat16)
    n_disc = disc_params["w1"].shape[0]

    def leaky(v):
        return jnp.where(v >= 0.0, v, LEAKY_SLOPE * v)

    total = jnp.float32(0.0)
    for d in range(n_disc):
        w1 = disc_params["w1"][d].astype(jnp.bfloat16)
        b1 = disc_params["b1"][d]
        w2 = disc_params["w2"][d].astype(jnp.bfloat16)
        b2 = disc_params["b2"][d]
        w3, b3 = disc_params["w3"][d], disc_params["b3"][d]

        def fwd(xx):
            a1 = leaky(jnp.dot(xx, w1, preferred_element_type=jnp.float32) + b1)
            a2 = leaky(jnp.dot(a1.astype(jnp.bfloat16), w2,
                               preferred_element_type=jnp.float32) + b2)
            s = jnp.sum(a2 * w3, axis=1, keepdims=True) + b3
            return a1, a2, s

        h1r, h2r, sr = fwd(xr)
        h1g, h2g, sg = fwd(xg)

        feature = (jnp.mean(jnp.abs(h1r - h1g)) + jnp.mean(jnp.abs(h2r - h2g))) * 2.0
        gen = jnp.mean((1.0 - sg) ** 2)

        dvec = (sg - sr).reshape(-1)
        med = jnp.sort(dvec)[(m - 1) // 2]      # torch lower median
        mask = dvec < med
        cnt = jnp.sum(mask.astype(jnp.float32))
        num = jnp.sum(jnp.where(mask, (dvec - med) ** 2, 0.0))
        l_rel = num / jnp.maximum(cnt, 1.0)
        tprls = TAU - jnp.maximum(TAU - l_rel, 0.0)

        total = total + feature + gen + tprls
    return total


# --------------------------------------------------------------------------
if __name__ == "__main__":
    B, T = 2, 256
    FRAME, HIDDEN = 32, 32
    N_DISCS = 2

    key = jax.random.PRNGKey(0)
    k_gt, k_gen, k_params = jax.random.split(key, 3)
    audio_gt = jax.random.normal(k_gt, (B, 1, T), jnp.float32)
    audio = jax.random.normal(k_gen, (B, 1, T), jnp.float32)
    params = make_stacked_disc_params(k_params, N_DISCS, FRAME, HIDDEN)

    fwd = jax.jit(generator_loss_helper_forward, static_argnames=("frame",))
    loss = jax.block_until_ready(fwd(params, audio_gt, audio, frame=FRAME))

    ref = jax.block_until_ready(reference_forward(params, audio_gt, audio, FRAME))
    assert jnp.allclose(loss, ref, rtol=1e-3, atol=1e-4), (loss, ref)

    print("KERNEL_OK")
</pallas_src>

<mosaic_0001>
module attributes {stable_mosaic.version = 11 : i64} {
  func.func @_generator_loss_kernel(%arg0: i32, %arg1: memref<32x32xbf16, #tpu.memory_space<vmem>>, %arg2: memref<1x32x32xbf16, #tpu.memory_space<vmem>>, %arg3: memref<1x1x32xf32, #tpu.memory_space<vmem>>, %arg4: memref<1x32x32xbf16, #tpu.memory_space<vmem>>, %arg5: memref<1x1x32xf32, #tpu.memory_space<vmem>>, %arg6: memref<1x1x32xf32, #tpu.memory_space<vmem>>, %arg7: memref<1x1x1xf32, #tpu.memory_space<vmem>>, %arg8: memref<1x1x1xf32, #tpu.memory_space<vmem>>) attributes {dimension_semantics = [#tpu.dimension_semantics<parallel>], iteration_bounds = array<i64: 2>, scalar_prefetch = 0 : i64, scratch_operands = 0 : i64, tpu.core_type = #tpu.core_type<tc>, window_params = [{pipeline_mode = #tpu.pipeline_mode<synchronous>, transform_indices = @transform_0, window_bounds = array<i64: 32, 32>}, {transform_indices = @transform_1, window_bounds = array<i64: 1, 32, 32>}, {transform_indices = @transform_2, window_bounds = array<i64: 1, 1, 32>}, {transform_indices = @transform_3, window_bounds = array<i64: 1, 32, 32>}, {transform_indices = @transform_4, window_bounds = array<i64: 1, 1, 32>}, {transform_indices = @transform_5, window_bounds = array<i64: 1, 1, 32>}, {transform_indices = @transform_6, window_bounds = array<i64: 1, 1, 1>}, {transform_indices = @transform_7, window_bounds = array<i64: 1, 1, 1>}]} {
    %c0 = arith.constant 0 : index
    %c0_0 = arith.constant 0 : index
    %0 = vector.load %arg1[%c0, %c0_0] : memref<32x32xbf16, #tpu.memory_space<vmem>>, vector<32x32xbf16>
    %c0_1 = arith.constant 0 : index
    %c0_2 = arith.constant 0 : index
    %c0_3 = arith.constant 0 : index
    %1 = vector.load %arg2[%c0_1, %c0_2, %c0_3] : memref<1x32x32xbf16, #tpu.memory_space<vmem>>, vector<1x32x32xbf16>
    %2 = vector.shape_cast %1 : vector<1x32x32xbf16> to vector<32x32xbf16>
    %cst = arith.constant dense<0.000000e+00> : vector<32x32xf32>
    %3 = tpu.matmul %0, %2, %cst {dimension_numbers = #tpu.dot_dimension_numbers<[1], [0], [0], [1], [0, 0, 1, 1], [], []>} : vector<32x32xbf16>, vector<32x32xbf16>, vector<32x32xf32> -> vector<32x32xf32>
    %c0_4 = arith.constant 0 : index
    %c0_5 = arith.constant 0 : index
    %c0_6 = arith.constant 0 : index
    %4 = vector.load %arg3[%c0_4, %c0_5, %c0_6] : memref<1x1x32xf32, #tpu.memory_space<vmem>>, vector<1x1x32xf32>
    %5 = vector.shape_cast %4 : vector<1x1x32xf32> to vector<1x32xf32>
    %6 = vector.broadcast %5 : vector<1x32xf32> to vector<32x32xf32>
    %7 = arith.addf %3, %6 : vector<32x32xf32>
    %cst_7 = arith.constant 0.000000e+00 : f32
    %8 = vector.broadcast %cst_7 : f32 to vector<32x32xf32>
    %9 = arith.cmpf oge, %7, %8 : vector<32x32xf32>
    %cst_8 = arith.constant 1.000000e-01 : f32
    %10 = vector.broadcast %cst_8 : f32 to vector<32x32xf32>
    %11 = arith.mulf %10, %7 : vector<32x32xf32>
    %12 = arith.select %9, %7, %11 : vector<32x32xi1>, vector<32x32xf32>
    %13 = arith.truncf %12 : vector<32x32xf32> to vector<32x32xbf16>
    %c0_9 = arith.constant 0 : index
    %c0_10 = arith.constant 0 : index
    %c0_11 = arith.constant 0 : index
    %14 = vector.load %arg4[%c0_9, %c0_10, %c0_11] : memref<1x32x32xbf16, #tpu.memory_space<vmem>>, vector<1x32x32xbf16>
    %15 = vector.shape_cast %14 : vector<1x32x32xbf16> to vector<32x32xbf16>
    %cst_12 = arith.constant dense<0.000000e+00> : vector<32x32xf32>
    %16 = tpu.matmul %13, %15, %cst_12 {dimension_numbers = #tpu.dot_dimension_numbers<[1], [0], [0], [1], [0, 0, 1, 1], [], []>} : vector<32x32xbf16>, vector<32x32xbf16>, vector<32x32xf32> -> vector<32x32xf32>
    %c0_13 = arith.constant 0 : index
    %c0_14 = arith.constant 0 : index
    %c0_15 = arith.constant 0 : index
    %17 = vector.load %arg5[%c0_13, %c0_14, %c0_15] : memref<1x1x32xf32, #tpu.memory_space<vmem>>, vector<1x1x32xf32>
    %18 = vector.shape_cast %17 : vector<1x1x32xf32> to vector<1x32xf32>
    %19 = vector.broadcast %18 : vector<1x32xf32> to vector<32x32xf32>
    %20 = arith.addf %16, %19 : vector<32x32xf32>
    %cst_16 = arith.constant 0.000000e+00 : f32
    %21 = vector.broadcast %cst_16 : f32 to vector<32x32xf32>
    %22 = arith.cmpf oge, %20, %21 : vector<32x32xf32>
    %cst_17 = arith.constant 1.000000e-01 : f32
    %23 = vector.broadcast %cst_17 : f32 to vector<32x32xf32>
    %24 = arith.mulf %23, %20 : vector<32x32xf32>
    %25 = arith.select %22, %20, %24 : vector<32x32xi1>, vector<32x32xf32>
    %c0_18 = arith.constant 0 : index
    %c0_19 = arith.constant 0 : index
    %c0_20 = arith.constant 0 : index
    %26 = vector.load %arg6[%c0_18, %c0_19, %c0_20] : memref<1x1x32xf32, #tpu.memory_space<vmem>>, vector<1x1x32xf32>
    %27 = vector.shape_cast %26 : vector<1x1x32xf32> to vector<1x32xf32>
    %28 = vector.broadcast %27 : vector<1x32xf32> to vector<32x32xf32>
    %29 = arith.mulf %25, %28 : vector<32x32xf32>
    %cst_21 = arith.constant dense<0.000000e+00> : vector<32xf32>
    %30 = vector.multi_reduction <add>, %29, %cst_21 [1] : vector<32x32xf32> to vector<32xf32>
    %31 = vector.shape_cast %30 : vector<32xf32> to vector<32x1xf32>
    %c0_22 = arith.constant 0 : index
    %c0_23 = arith.constant 0 : index
    %c0_24 = arith.constant 0 : index
    %32 = vector.load %arg7[%c0_22, %c0_23, %c0_24] : memref<1x1x1xf32, #tpu.memory_space<vmem>>, vector<1x1x1xf32>
    %33 = vector.shape_cast %32 : vector<1x1x1xf32> to vector<1x1xf32>
    %34 = vector.broadcast %33 : vector<1x1xf32> to vector<32x1xf32>
    %35 = arith.addf %31, %34 : vector<32x1xf32>
    %36 = vector.extract_strided_slice %12 {offsets = [0, 0], sizes = [16, 32], strides = [1, 1]} : vector<32x32xf32> to vector<16x32xf32>
    %37 = vector.extract_strided_slice %12 {offsets = [16, 0], sizes = [16, 32], strides = [1, 1]} : vector<32x32xf32> to vector<16x32xf32>
    %38 = vector.extract_strided_slice %25 {offsets = [0, 0], sizes = [16, 32], strides = [1, 1]} : vector<32x32xf32> to vector<16x32xf32>
    %39 = vector.extract_strided_slice %25 {offsets = [16, 0], sizes = [16, 32], strides = [1, 1]} : vector<32x32xf32> to vector<16x32xf32>
    %40 = vector.extract_strided_slice %35 {offsets = [0, 0], sizes = [16, 1], strides = [1, 1]} : vector<32x1xf32> to vector<16x1xf32>
    %41 = vector.extract_strided_slice %35 {offsets = [16, 0], sizes = [16, 1], strides = [1, 1]} : vector<32x1xf32> to vector<16x1xf32>
    %42 = arith.subf %36, %37 : vector<16x32xf32>
    %43 = math.absf %42 : vector<16x32xf32>
    %44 = vector.shape_cast %43 : vector<16x32xf32> to vector<1x16x32xf32>
    %cst_25 = arith.constant dense<0.000000e+00> : vector<1xf32>
    %45 = vector.multi_reduction <add>, %44, %cst_25 [1, 2] : vector<1x16x32xf32> to vector<1xf32>
    %46 = vector.shape_cast %45 : vector<1xf32> to vector<1x1x1xf32>
    %47 = vector.extract %46[0, 0, 0] : f32 from vector<1x1x1xf32>
    %48 = vector.broadcast %47 : f32 to vector<1x1xf32>
    %49 = arith.subf %38, %39 : vector<16x32xf32>
    %50 = math.absf %49 : vector<16x32xf32>
    %51 = vector.shape_cast %50 : vector<16x32xf32> to vector<1x16x32xf32>
    %cst_26 = arith.constant dense<0.000000e+00> : vector<1xf32>
    %52 = vector.multi_reduction <add>, %51, %cst_26 [1, 2] : vector<1x16x32xf32> to vector<1xf32>
    %53 = vector.shape_cast %52 : vector<1xf32> to vector<1x1x1xf32>
    %54 = vector.extract %53[0, 0, 0] : f32 from vector<1x1x1xf32>
    %55 = vector.broadcast %54 : f32 to vector<1x1xf32>
    %56 = arith.addf %48, %55 : vector<1x1xf32>
    %cst_27 = arith.constant 3.906250e-03 : f32
    %57 = vector.broadcast %cst_27 : f32 to vector<1x1xf32>
    %58 = arith.mulf %56, %57 : vector<1x1xf32>
    %cst_28 = arith.constant 1.000000e+00 : f32
    %59 = vector.broadcast %cst_28 : f32 to vector<16x1xf32>
    %60 = arith.subf %59, %41 : vector<16x1xf32>
    %61 = arith.mulf %60, %60 : vector<16x1xf32>
    %62 = vector.shape_cast %61 : vector<16x1xf32> to vector<1x16x1xf32>
    %cst_29 = arith.constant dense<0.000000e+00> : vector<1xf32>
    %63 = vector.multi_reduction <add>, %62, %cst_29 [1, 2] : vector<1x16x1xf32> to vector<1xf32>
    %64 = vector.shape_cast %63 : vector<1xf32> to vector<1x1x1xf32>
    %65 = vector.extract %64[0, 0, 0] : f32 from vector<1x1x1xf32>
    %66 = vector.broadcast %65 : f32 to vector<1x1xf32>
    %cst_30 = arith.constant 6.250000e-02 : f32
    %67 = vector.broadcast %cst_30 : f32 to vector<1x1xf32>
    %68 = arith.mulf %66, %67 : vector<1x1xf32>
    %69 = arith.subf %41, %40 : vector<16x1xf32>
    %70 = tpu.transpose %69, [1, 0] : vector<16x1xf32> -> vector<1x16xf32>
    %71 = vector.broadcast %69 : vector<16x1xf32> to vector<16x16xf32>
    %72 = vector.broadcast %70 : vector<1x16xf32> to vector<16x16xf32>
    %73 = arith.cmpf olt, %71, %72 : vector<16x16xf32>
    %74 = arith.extui %73 : vector<16x16xi1> to vector<16x16xi32>
    %75 = arith.sitofp %74 : vector<16x16xi32> to vector<16x16xf32>
    %cst_31 = arith.constant dense<0.000000e+00> : vector<16xf32>
    %76 = vector.multi_reduction <add>, %75, %cst_31 [0] : vector<16x16xf32> to vector<16xf32>
    %77 = vector.shape_cast %76 : vector<16xf32> to vector<1x16xf32>
    %78 = vector.broadcast %69 : vector<16x1xf32> to vector<16x16xf32>
    %79 = vector.broadcast %70 : vector<1x16xf32> to vector<16x16xf32>
    %80 = arith.cmpf ole, %78, %79 : vector<16x16xf32>
    %81 = arith.extui %80 : vector<16x16xi1> to vector<16x16xi32>
    %82 = arith.sitofp %81 : vector<16x16xi32> to vector<16x16xf32>
    %cst_32 = arith.constant dense<0.000000e+00> : vector<16xf32>
    %83 = vector.multi_reduction <add>, %82, %cst_32 [0] : vector<16x16xf32> to vector<16xf32>
    %84 = vector.shape_cast %83 : vector<16xf32> to vector<1x16xf32>
    %cst_33 = arith.constant 7.000000e+00 : f32
    %85 = vector.broadcast %cst_33 : f32 to vector<1x16xf32>
    %86 = arith.cmpf ole, %77, %85 : vector<1x16xf32>
    %cst_34 = arith.constant 7.000000e+00 : f32
    %87 = vector.broadcast %cst_34 : f32 to vector<1x16xf32>
    %88 = arith.cmpf ogt, %84, %87 : vector<1x16xf32>
    %89 = arith.andi %86, %88 : vector<1x16xi1>
    %cst_35 = arith.constant 0xFF800000 : f32
    %90 = vector.broadcast %cst_35 : f32 to vector<1x16xf32>
    %91 = arith.select %89, %70, %90 : vector<1x16xi1>, vector<1x16xf32>
    %92 = vector.shape_cast %91 : vector<1x16xf32> to vector<1x1x16xf32>
    %cst_36 = arith.constant dense<0xFF800000> : vector<1xf32>
    %93 = vector.multi_reduction <maximumf>, %92, %cst_36 [1, 2] : vector<1x1x16xf32> to vector<1xf32>
    %94 = vector.shape_cast %93 : vector<1xf32> to vector<1x1x1xf32>
    %95 = vector.extract %94[0, 0, 0] : f32 from vector<1x1x1xf32>
    %96 = vector.broadcast %95 : f32 to vector<1x1xf32>
    %97 = vector.broadcast %96 : vector<1x1xf32> to vector<1x16xf32>
    %98 = arith.cmpf olt, %70, %97 : vector<1x16xf32>
    %99 = vector.broadcast %96 : vector<1x1xf32> to vector<1x16xf32>
    %100 = arith.subf %70, %99 : vector<1x16xf32>
    %101 = arith.mulf %100, %100 : vector<1x16xf32>
    %cst_37 = arith.constant 0.000000e+00 : f32
    %102 = vector.broadcast %cst_37 : f32 to vector<1x16xf32>
    %103 = arith.select %98, %101, %102 : vector<1x16xi1>, vector<1x16xf32>
    %104 = vector.shape_cast %103 : vector<1x16xf32> to vector<1x1x16xf32>
    %cst_38 = arith.constant dense<0.000000e+00> : vector<1xf32>
    %105 = vector.multi_reduction <add>, %104, %cst_38 [1, 2] : vector<1x1x16xf32> to vector<1xf32>
    %106 = vector.shape_cast %105 : vector<1xf32> to vector<1x1x1xf32>
    %107 = vector.extract %106[0, 0, 0] : f32 from vector<1x1x1xf32>
    %108 = vector.broadcast %107 : f32 to vector<1x1xf32>
    %109 = arith.extui %98 : vector<1x16xi1> to vector<1x16xi32>
    %110 = arith.sitofp %109 : vector<1x16xi32> to vector<1x16xf32>
    %111 = vector.shape_cast %110 : vector<1x16xf32> to vector<1x1x16xf32>
    %cst_39 = arith.constant dense<0.000000e+00> : vector<1xf32>
    %112 = vector.multi_reduction <add>, %111, %cst_39 [1, 2] : vector<1x1x16xf32> to vector<1xf32>
    %113 = vector.shape_cast %112 : vector<1xf32> to vector<1x1x1xf32>
    %114 = vector.extract %113[0, 0, 0] : f32 from vector<1x1x1xf32>
    %115 = vector.broadcast %114 : f32 to vector<1x1xf32>
    %cst_40 = arith.constant 1.000000e+00 : f32
    %116 = vector.broadcast %cst_40 : f32 to vector<1x1xf32>
    %117 = arith.maximumf %115, %116 : vector<1x1xf32>
    %118 = arith.divf %108, %117 : vector<1x1xf32>
    %cst_41 = arith.constant 4.000000e-02 : f32
    %119 = vector.broadcast %cst_41 : f32 to vector<1x1xf32>
    %120 = arith.subf %119, %118 : vector<1x1xf32>
    %cst_42 = arith.constant 0.000000e+00 : f32
    %121 = vector.broadcast %cst_42 : f32 to vector<1x1xf32>
    %122 = arith.maximumf %120, %121 : vector<1x1xf32>
    %cst_43 = arith.constant 4.000000e-02 : f32
    %123 = vector.broadcast %cst_43 : f32 to vector<1x1xf32>
    %124 = arith.subf %123, %122 : vector<1x1xf32>
    %125 = arith.addf %58, %68 : vector<1x1xf32>
    %126 = arith.addf %125, %124 : vector<1x1xf32>
    %c0_44 = arith.constant 0 : index
    %c0_45 = arith.constant 0 : index
    %c0_46 = arith.constant 0 : index
    %127 = vector.load %arg8[%c0_44, %c0_45, %c0_46] : memref<1x1x1xf32, #tpu.memory_space<vmem>>, vector<1x1x1xf32>
    %128 = vector.shape_cast %127 : vector<1x1x1xf32> to vector<1x1xf32>
    %129 = vector.shape_cast %126 : vector<1x1xf32> to vector<1x1x1xf32>
    tpu.vector_store %arg8[%c0_44, %c0_45, %c0_46], %129 {strides = array<i32>} : memref<1x1x1xf32, #tpu.memory_space<vmem>>, vector<1x1x1xf32>,
    return
  }
  func.func @transform_0(%arg0: i32) -> (i32, i32) {
    %c0_i32 = arith.constant 0 : i32
    %c0_i32_0 = arith.constant 0 : i32
    %c0_i32_1 = arith.constant 0 : i32
    return %c0_i32, %c0_i32_0 : i32, i32
  }
  func.func @transform_1(%arg0: i32) -> (i32, i32, i32) {
    %c0_i32 = arith.constant 0 : i32
    %c0_i32_0 = arith.constant 0 : i32
    %c0_i32_1 = arith.constant 0 : i32
    return %arg0, %c0_i32, %c0_i32_0 : i32, i32, i32
  }
  func.func @transform_2(%arg0: i32) -> (i32, i32, i32) {
    %c0_i32 = arith.constant 0 : i32
    %c0_i32_0 = arith.constant 0 : i32
    %c0_i32_1 = arith.constant 0 : i32
    return %arg0, %c0_i32, %c0_i32_0 : i32, i32, i32
  }
  func.func @transform_3(%arg0: i32) -> (i32, i32, i32) {
    %c0_i32 = arith.constant 0 : i32
    %c0_i32_0 = arith.constant 0 : i32
    %c0_i32_1 = arith.constant 0 : i32
    return %arg0, %c0_i32, %c0_i32_0 : i32, i32, i32
  }
  func.func @transform_4(%arg0: i32) -> (i32, i32, i32) {
    %c0_i32 = arith.constant 0 : i32
    %c0_i32_0 = arith.constant 0 : i32
    %c0_i32_1 = arith.constant 0 : i32
    return %arg0, %c0_i32, %c0_i32_0 : i32, i32, i32
  }
  func.func @transform_5(%arg0: i32) -> (i32, i32, i32) {
    %c0_i32 = arith.constant 0 : i32
    %c0_i32_0 = arith.constant 0 : i32
    %c0_i32_1 = arith.constant 0 : i32
    return %arg0, %c0_i32, %c0_i32_0 : i32, i32, i32
  }
  func.func @transform_6(%arg0: i32) -> (i32, i32, i32) {
    %c0_i32 = arith.constant 0 : i32
    %c0_i32_0 = arith.constant 0 : i32
    %c0_i32_1 = arith.constant 0 : i32
    return %arg0, %c0_i32, %c0_i32_0 : i32, i32, i32
  }
  func.func @transform_7(%arg0: i32) -> (i32, i32, i32) {
    %c0_i32 = arith.constant 0 : i32
    %c0_i32_0 = arith.constant 0 : i32
    %c0_i32_1 = arith.constant 0 : i32
    return %arg0, %c0_i32, %c0_i32_0 : i32, i32, i32
  }
}

</mosaic_0001>

<bundles_post_ra>
// kernel: generator_loss_helper_forward.1
= control target key start
LH: loop header
LB: loop body
LE: loop exit
PB: predicated region body
PF: predicated region fallthrough
CT: control target
= control target key end

     0   :  { %s1004_s24 = smov 0   ;;  %s1086_s0 = inlined_call_operand.vmem [shape: bf16[32,32], index: 0, kind: input, shape index: {}]   ;;  %s1087_s1 = inlined_call_operand.vmem [shape: bf16[2,32,32], index: 1, kind: input, shape index: {}]   ;;  %s1088_s2 = inlined_call_operand.vmem [shape: f32[2,1,32], index: 2, kind: input, shape index: {}]   ;;  %s1089_s3 = inlined_call_operand.vmem [shape: bf16[2,32,32], index: 3, kind: input, shape index: {}]   ;;  %s1090_s4 = inlined_call_operand.vmem [shape: f32[2,1,32], index: 4, kind: input, shape index: {}]   ;;  %s1091_s5 = inlined_call_operand.vmem [shape: f32[2,1,32], index: 5, kind: input, shape index: {}]   ;;  %s1092_s6 = inlined_call_operand.vmem [shape: f32[2,1,1], index: 6, kind: input, shape index: {}]   ;;  %s1093_s7 = inlined_call_operand.vmem [shape: f32[2,1,1], index: 7, kind: output, shape index: {}]  }
   0x1 LB: > { %s866_s25 = sadd.s32 4294967295, %s960_s24   ;;  %p870_p0 = scmp.ge.s32.totalorder %s960_s24, 1  ;;  %s960_s24 = sphi %s1004_s24, %s17_s24  }
   0x2   : > { %p279_p1 = scmp.lt.s32.totalorder %s960_s24, 3 }
   0x4   : > { %p280_p2 = pnand %p870_p0, %p279_p1 }
   0x5   : > { %p326_p3 = scmp.lt.s32.totalorder (!%p280_p2), %s866_s25, 1 }
   0x6   : > { %283 = sbr.rel (%p280_p2) target bundleno = 1208 (0x4b8), region = 48 }
   0xb   : > { %v948_v0 = vld [vmem:[%s1086_s0] sm:$0xff]   ;;  %vm389_vm0 = vcmask 261120   ;;  %s1095_s25 = smov (!%p326_p3, %s866_s25), 1  ;;  %v949_v3 = vld [vmem:[%s1086_s0 + $0x8] sm:$0xff]   ;;  %vm623_vm9 = vcmask 7168   ;;  %vm692_vm10 = vcmask 130048  }
   0xc   : > { %910 = vmatprep.mubr.msk.bf16.mxu0 %vm389_vm0, %v948_v0  ;;  %s896_s28 = sshll.u32 %s1095_s25, 4  ;;  %s333_s16 = scalar_lea.vmem %s1088_s2, %s1095_s25 }
   0xd   : > { %s330_s8 = scalar_lea.vmem %s1087_s1, %s896_s28  ;;  %s338_s13 = scalar_lea.vmem %s1089_s3, %s896_s28  ;;  %v875_v6 = vld [vmem:[%s333_s16] ss:$0 sm:$0xff] }
   0xe   : > { %v946_v1 = vld [vmem:[%s330_s8 + $0x8] sm:$0xff]   ;;  %v947_v2 = vld [vmem:[%s330_s8] sm:$0xff]   ;;  %s341_s19 = scalar_lea.vmem %s1090_s4, %s1095_s25  ;;  %s344_s22 = scalar_lea.vmem %s1091_s5, %s1095_s25 }
   0xf   : > { %906 = vmatprep.subr.bf16.mxu0 %v946_v1  ;;  %v950_v4 = vld [vmem:[%s338_s13 + $0x8] sm:$0xff]   ;;  %v951_v5 = vld [vmem:[%s338_s13] sm:$0xff]   ;;  %s347_s27 = scalar_lea.vmem %s1092_s6, %s1095_s25  ;;  %s350_s13 = scalar_lea.vmem %s1093_s7, %s1095_s25 }
  0x10   : > { %907 = vmatpush3.bf16.msra.mxu0 %v946_v1  ;;  %914 = vmatprep.subr.bf16.mxu1 %v950_v4  ;;  %v882_v32 = vld [vmem:[%s341_s19] ss:$0 sm:$0xff]  ;;  %v962_v1 = vmov 0  }
  0x11   : > { %908 = vmatprep.subr.bf16.mxu0 %v947_v2  ;;  %915 = vmatpush3.bf16.msra.mxu1 %v950_v4  ;;  %v887_v38 = vld [vmem:[%s344_s22] ss:$0 sm:$0xff] }
  0x12   : > { %916 = vmatprep.subr.bf16.mxu1 %v951_v5  ;;  %944 = vset.pattern.permute.xlu0 %v962_v1 }
  0x13   : > { %945 = vset.pattern.permute.xlu1 %v962_v1 }
  0x14   : > { %909 = vmatpush3.bf16.msra.mxu0 %v947_v2  ;;  %v888_v2 = vld [vmem:[%s347_s27] ss:$0 sm:$0xff] }
  0x15   : > { %917 = vmatpush3.bf16.msra.mxu1 %v951_v5 }
  0x17   : > { %911 = vmatmul.mubr.msk.bf16.vlgmr.msra.gmra.mxu0 %vm389_vm0, %v949_v3 }
  0xd7   : > { %v912_v7 = vpop.f32.mrf.mxu0 }
  0xd8   : > { %v439_v8 = vadd.f32 %v912_v7, %v875_v6 }
  0xd9   : > { %v430_v9 = vpop.f32.mrf.mxu0 }
  0xda   : > { %vm447_vm1 = vcmp.ge.f32.partialorder %v439_v8, 0.0  ;;  %v451_v10 = vmul.f32 0.1, %v439_v8  ;;  %v431_v11 = vadd.f32 %v875_v6, %v430_v9 }
  0xdb   : > { %v913_v12 = vpop.f32.mrf.mxu0 }
  0xdc   : > { %v449_v13 = vmul.f32 0.1, %v431_v11  ;;  %v442_v14 = vadd.f32 %v913_v12, %v875_v6  ;;  %vm445_vm2 = vcmp.ge.f32.partialorder %v431_v11, 0.0  ;;  %v455_v16 = vsel %vm447_vm1, %v439_v8, %v451_v10 }
  0xdd   : > { %v433_v15 = vpop.f32.mrf.mxu0  ;;  %vm721_vm1 = vcmask 122880  }
  0xde   : > { %vm448_vm3 = vcmp.ge.f32.partialorder %v442_v14, 0.0  ;;  %v452_v17 = vmul.f32 0.1, %v442_v14  ;;  %v434_v18 = vadd.f32 %v875_v6, %v433_v15  ;;  %v453_v19 = vsel %vm445_vm2, %v431_v11, %v449_v13 }
  0xdf   : > { %v583_v20 = vsub.f32 %v453_v19, %v455_v16 }
  0xe0   : > { %v450_v21 = vmul.f32 0.1, %v434_v18  ;;  %vm446_vm4 = vcmp.ge.f32.partialorder %v434_v18, 0.0  ;;  %v456_v22 = vsel %vm448_vm3, %v442_v14, %v452_v17 }
  0xe1   : > { %v585_v26 = vand.u32 2147483647, %v583_v20  ;;  %v458_v27 = vpack.c.bf16 %v456_v22, %v455_v16  ;;  %v682_v20 = vlaneseq }
  0xe2   : > { %v454_v23 = vsel %vm446_vm4, %v434_v18, %v450_v21  ;;  %vm769_vm4 = vcmask 0  }
  0xe3   : > { %v457_v24 = vpack.c.bf16 %v454_v23, %v453_v19  ;;  %v584_v25 = vsub.f32 %v454_v23, %v456_v22  ;;  %v587_v29 = vsel %vm389_vm0, %v585_v26, 0.0  ;;  %v683_v21 = vshrl.u32 %v682_v20, 7 }
  0xe5   : > { %918 = vmatprep.mubr.msk.bf16.mxu1 %vm389_vm0, %v457_v24  ;;  %v586_v28 = vand.u32 2147483647, %v584_v25  ;;  %v684_v24 = vsub.s32 0, %v683_v21 }
  0xe6   : > { %919 = vmatmul.mubr.msk.bf16.vlgmr.msra.gmra.mxu1 %vm389_vm0, %v458_v27 }
  0xe7   : > { %v588_v30 = vsel %vm389_vm0, %v586_v28, 0.0 }
  0xe8   : > { %v1037_v31 = vadd.f32 %v588_v30, %v587_v29 }
 0x1a6   : > { %v920_v33 = vpop.f32.mrf.mxu1 }
 0x1a7   : > { %v531_v34 = vadd.f32 %v920_v33, %v882_v32 }
 0x1a8   : > { %v522_v35 = vpop.f32.mrf.mxu1 }
 0x1a9   : > { %v543_v36 = vmul.f32 0.1, %v531_v34  ;;  %v523_v37 = vadd.f32 %v882_v32, %v522_v35  ;;  %vm539_vm5 = vcmp.ge.f32.partialorder %v531_v34, 0.0 }
 0x1aa   : > { %v921_v39 = vpop.f32.mrf.mxu1 }
 0x1ab   : > { %v541_v40 = vmul.f32 0.1, %v523_v37  ;;  %v534_v41 = vadd.f32 %v921_v39, %v882_v32  ;;  %v547_v42 = vsel %vm539_vm5, %v531_v34, %v543_v36  ;;  %vm537_vm6 = vcmp.ge.f32.partialorder %v523_v37, 0.0 }
 0x1ac   : > { %v525_v43 = vpop.f32.mrf.mxu1  ;;  %v558_v44 = vmul.f32 %v887_v38, %v547_v42 }
 0x1ad   : > { %vm540_vm7 = vcmp.ge.f32.partialorder %v534_v41, 0.0  ;;  %v544_v45 = vmul.f32 0.1, %v534_v41  ;;  %v526_v46 = vadd.f32 %v882_v32, %v525_v43  ;;  %v545_v47 = vsel %vm537_vm6, %v523_v37, %v541_v40 }
 0x1ae   : > { %v566_v48 = vsel %vm389_vm0, %v558_v44, 0.0  ;;  %v556_v49 = vmul.f32 %v887_v38, %v545_v47  ;;  %v600_v50 = vsub.f32 %v545_v47, %v547_v42 }
 0x1af   : > { %vm538_vm8 = vcmp.ge.f32.partialorder %v526_v46, 0.0  ;;  %v542_v51 = vmul.f32 0.1, %v526_v46  ;;  %567 = vadd.xlane.f32.xlu1 %v566_v48  ;;  %v548_v52 = vsel %vm540_vm7, %v534_v41, %v544_v45 }
 0x1b0   : > { %v560_v53 = vsel %vm389_vm0, %v556_v49, 0.0  ;;  %v559_v54 = vmul.f32 %v887_v38, %v548_v52  ;;  %v602_v56 = vand.u32 2147483647, %v600_v50 }
 0x1b1   : > { %561 = vadd.xlane.f32.xlu0 %v560_v53  ;;  %v546_v55 = vsel %vm538_vm8, %v526_v46, %v542_v51 }
 0x1b2   : > { %v569_v57 = vsel %vm389_vm0, %v559_v54, 0.0  ;;  %v557_v58 = vmul.f32 %v887_v38, %v546_v55  ;;  %v601_v59 = vsub.f32 %v546_v55, %v548_v52  ;;  %v604_v62 = vsel %vm389_vm0, %v602_v56, 0.0 }
 0x1b3   : > { %570 = vadd.xlane.f32.xlu1 %v569_v57 }
 0x1b4   : > { %v563_v60 = vsel %vm389_vm0, %v557_v58, 0.0  ;;  %v603_v61 = vand.u32 2147483647, %v601_v59 }
 0x1b5   : > { %564 = vadd.xlane.f32.xlu0 %v563_v60 }
 0x1b6   : > { %v605_v63 = vsel %vm389_vm0, %v603_v61, 0.0 }
 0x1b7   : > { %v606_v0 = vadd.f32 %v605_v63, %v604_v62 }
 0x238   : > { %v568_v3 = vpop.xlane.xlu1 %567 }
 0x239   : > { %v581_v5 = vadd.f32 %v888_v2, %v568_v3 }
 0x23a   : > { %v562_v4 = vpop.xlane.xlu0 %561 }
 0x23b   : > { %v579_v6 = vadd.f32 %v888_v2, %v562_v4  ;;  %v619_v14 = vsub.f32 1.0, %v581_v5 }
 0x23c   : > { %v571_v7 = vpop.xlane.xlu1 %570 }
 0x23d   : > { %v638_v8 = vsub.f32 %v581_v5, %v579_v6  ;;  %v582_v10 = vadd.f32 %v888_v2, %v571_v7  ;;  %v621_v16 = vmul.f32 %v619_v14, %v619_v14 }
 0x23e   : > { %v565_v9 = vpop.xlane.xlu0 %564 }
 0x23f   : > { %v580_v11 = vadd.f32 %v888_v2, %v565_v9  ;;  %674 = vperm.xlu0 %944, %v638_v8   ;;  %v620_v13 = vsub.f32 1.0, %v582_v10  ;;  %v624_v18 = vsel %vm623_vm9, %v621_v16, 0.0 }
 0x241   : > { %v639_v12 = vsub.f32 %v582_v10, %v580_v11  ;;  %v622_v15 = vmul.f32 %v620_v13, %v620_v13 }
 0x243   : > { %679 = vperm.xlu1 %945, %v639_v12   ;;  %v625_v17 = vsel %vm623_vm9, %v622_v15, 0.0 }
 0x244   : > { %v626_v19 = vadd.f32 %v625_v17, %v624_v18 }
 0x25e   : > { %590 = vadd.xlane.f32.xlu0 %v1037_v31  ;;  %v963_v31 = vmov 0.0  }
 0x262   : > { %627 = vadd.xlane.f32.xlu0 %v626_v19 }
 0x26c   : > { %640 = vxpose.xlu1.b32.start [1/2] (short) (narrow) %v638_v8, 8 }
 0x270   : > { %641 = vxpose.xlu1.b32.end [2/2] (short) (narrow) %v639_v12, 8 }
 0x297   : > { %607 = vadd.xlane.f32.xlu1 %v606_v0 }
 0x2ba   : > { %v675_v22 = vpop.permute.xlu0 %674 }
 0x2be   : > { %v680_v23 = vpop.permute.xlu1 %679 }
 0x2e7   : > { %v591_v25 = vpop.xlane.xlu0 %590 }
 0x2e8   : > { %v592_v26 = vrot.slane %v591_v25, 4  ;;  %v1058_v27 = vpop.trf.xlu1 }
 0x2e9   : > { %v685_v28 = vrot.slane %v1058_v27, %v684_v24 }
 0x2ea   : > { %v593_v29 = vadd.f32 %v592_v26, %v591_v25 }
 0x2eb   : > { %vm686_vm11 = vcmp.lt.f32.partialorder %v675_v22, %v685_v28  ;;  %vm687_vm12 = vcmp.lt.f32.partialorder %v680_v23, %v685_v28  ;;  %vm702_vm13 = vcmp.le.f32.partialorder %v675_v22, %v685_v28  ;;  %vm703_vm14 = vcmp.le.f32.partialorder %v680_v23, %v685_v28  ;;  %v628_v59 = vpop.xlane.xlu0 %627 }
 0x2ec   : > { %v594_v30 = vrot.slane %v593_v29, 2  ;;  %v889_v32 = vsel %vm686_vm11, 1.0, %v963_v31  ;;  %v890_v33 = vsel %vm687_vm12, 1.0, %v963_v31  ;;  %v891_v36 = vsel %vm702_vm13, 1.0, %v963_v31 }
 0x2ed   : > { %v693_v34 = vsel %vm692_vm10, %v889_v32, 0.0  ;;  %v694_v35 = vsel %vm692_vm10, %v890_v33, 0.0  ;;  %v892_v37 = vsel %vm703_vm14, 1.0, %v963_v31  ;;  %v708_v40 = vsel %vm692_vm10, %v891_v36, 0.0 }
 0x2ee   : > { %v595_v38 = vadd.f32 %v594_v30, %v593_v29  ;;  %v695_v39 = vadd.f32 %v694_v35, %v693_v34  ;;  %v709_v41 = vsel %vm692_vm10, %v892_v37, 0.0  ;;  %v629_v60 = vrot.slane %v628_v59, 4 }
 0x2ef   : > { %v710_v44 = vadd.f32 %v709_v41, %v708_v40 }
 0x2f0   : > { %v596_v42 = vrot.slane %v595_v38, 1  ;;  %v696_v43 = vrot.slane %v695_v39, 4  ;;  %v630_v61 = vadd.f32 %v629_v60, %v628_v59 }
 0x2f1   : > { %v711_v47 = vrot.slane %v710_v44, 4 }
 0x2f2   : > { %v597_v45 = vadd.f32 %v596_v42, %v595_v38  ;;  %v697_v46 = vadd.f32 %v696_v43, %v695_v39  ;;  %v631_v62 = vrot.slane %v630_v61, 2 }
 0x2f3   : > { %v712_v49 = vadd.f32 %v711_v47, %v710_v44 }
 0x2f4   : > { %922 = vpush %v597_v45  ;;  %v698_v48 = vrot.slane %v697_v46, 2  ;;  %v632_v2 = vadd.f32 %v631_v62, %v630_v61 }
 0x2f5   : > { %v713_v51 = vrot.slane %v712_v49, 2 }
 0x2f6   : > { %v699_v50 = vadd.f32 %v698_v48, %v697_v46  ;;  %v633_v5 = vrot.slane %v632_v2, 1 }
 0x2f7   : > { %v714_v53 = vadd.f32 %v713_v51, %v712_v49 }
 0x2f8   : > { %v700_v52 = vrot.slane %v699_v50, 1  ;;  %v634_v8 = vadd.f32 %v633_v5, %v632_v2 }
 0x2f9   : > { %v715_v55 = vrot.slane %v714_v53, 1 }
 0x2fa   : > { %v701_v54 = vadd.f32 %v700_v52, %v699_v50 }
 0x2fb   : > { %v716_v56 = vadd.f32 %v715_v55, %v714_v53 }
 0x2fc   : > { %vm717_vm15 = vcmp.le.f32.partialorder %v701_v54, 7.0 }
 0x2fd   : > { %vm718_vm0 = vcmp.gt.f32.partialorder %v716_v56, 7.0 }
 0x2fe   : > { %vm719_vm2 = vmand %vm717_vm15, %vm718_vm0 }
 0x2ff   : > { %v720_v57 = vsel %vm719_vm2, %v1058_v27, -inf }
 0x300   : > { %v722_v58 = vsel %vm721_vm1, %v720_v57, -inf }
 0x301   : > { %723 = vmax.xlane.f32.xlu0 %v722_v58 }
 0x320   : > { %v608_v63 = vpop.xlane.xlu1 %607 }
 0x321   : > { %v609_v0 = vrot.slane %v608_v63, 4 }
 0x323   : > { %v610_v1 = vadd.f32 %v609_v0, %v608_v63 }
 0x325   : > { %v611_v3 = vrot.slane %v610_v1, 2  ;;  %s923_s28 = spop %922 }
 0x326   : > { %v599_v9 = vstv %s923_s28 }
 0x327   : > { %v612_v4 = vadd.f32 %v611_v3, %v610_v1 }
 0x329   : > { %v613_v6 = vrot.slane %v612_v4, 1 }
 0x32b   : > { %v614_v7 = vadd.f32 %v613_v6, %v612_v4 }
 0x32d   : > { %924 = vpush %v614_v7 }
 0x32e   : > { %926 = vpush %v634_v8 }
 0x35e   : > { %s925_s29 = spop %924 }
 0x35f   : > { %v616_v10 = vstv %s925_s29  ;;  %s1071_s30 = spop %926 }
 0x360   : > { %v617_v11 = vadd.f32 %v616_v10, %v599_v9  ;;  %v636_v45 = vstv %s1071_s30 }
 0x361   : > { %v637_v48 = vmul.f32 0.0625, %v636_v45 }
 0x362   : > { %v618_v46 = vmul.f32 0.00390625, %v617_v11 }
 0x364   : > { %v767_v50 = vadd.f32 %v637_v48, %v618_v46 }
 0x38a   : > { %v724_v12 = vpop.xlane.xlu0 %723 }
 0x38b   : > { %v725_v13 = vrot.slane %v724_v12, 4 }
 0x38d   : > { %v726_v14 = vmax.f32 %v724_v12, %v725_v13 }
 0x38f   : > { %v727_v15 = vrot.slane %v726_v14, 2 }
 0x391   : > { %v728_v16 = vmax.f32 %v726_v14, %v727_v15 }
 0x393   : > { %v729_v17 = vrot.slane %v728_v16, 1 }
 0x395   : > { %v730_v18 = vmax.f32 %v728_v16, %v729_v17 }
 0x397   : > { %928 = vpush %v730_v18 }
 0x3c8   : > { %s929_s8 = spop %928 }
 0x3c9   : > { %v732_v19 = vstv %s929_s8 }
 0x3ca   : > { %v734_v20 = vsub.f32 %v1058_v27, %v732_v19  ;;  %vm733_vm3 = vcmp.lt.f32.partialorder %v1058_v27, %v732_v19 }
 0x3cb   : > { %v893_v24 = vsel %vm733_vm3, 1.0, %v963_v31 }
 0x3cc   : > { %v735_v21 = vmul.f32 %v734_v20, %v734_v20  ;;  %v750_v25 = vsel %vm721_vm1, %v893_v24, 0.0 }
 0x3ce   : > { %v736_v22 = vsel %vm733_vm3, %v735_v21, 0.0 }
 0x3cf   : > { %v737_v23 = vsel %vm721_vm1, %v736_v22, 0.0 }
 0x3d0   : > { %738 = vadd.xlane.f32.xlu0 %v737_v23 }
 0x3d4   : > { %751 = vadd.xlane.f32.xlu0 %v750_v25 }
 0x459   : > { %v739_v26 = vpop.xlane.xlu0 %738 }
 0x45a   : > { %v740_v28 = vrot.slane %v739_v26, 4 }
 0x45c   : > { %v741_v29 = vadd.f32 %v740_v28, %v739_v26 }
 0x45d   : > { %v752_v30 = vpop.xlane.xlu0 %751 }
 0x45e   : > { %v742_v32 = vrot.slane %v741_v29, 2  ;;  %v753_v33 = vrot.slane %v752_v30, 4 }
 0x460   : > { %v754_v34 = vadd.f32 %v753_v33, %v752_v30  ;;  %v743_v35 = vadd.f32 %v742_v32, %v741_v29 }
 0x462   : > { %v755_v36 = vrot.slane %v754_v34, 2  ;;  %v744_v27 = vrot.slane %v743_v35, 1 }
 0x464   : > { %v756_v37 = vadd.f32 %v755_v36, %v754_v34  ;;  %v745_v38 = vadd.f32 %v744_v27, %v743_v35 }
 0x466   : > { %930 = vpush %v745_v38  ;;  %v757_v39 = vrot.slane %v756_v37, 1 }
 0x468   : > { %v758_v40 = vadd.f32 %v757_v39, %v756_v37 }
 0x46a   : > { %932 = vpush %v758_v40 }
 0x497   : > { %s931_s9 = spop %930 }
 0x498   : > { %v747_v43 = vstv %s931_s9 }
 0x49b   : > { %s933_s10 = spop %932 }
 0x49c   : > { %v760_v31 = vstv %s933_s10 }
 0x49d   : > { %v761_v41 = vmax.f32 %v760_v31, 1.0 }
 0x49f   : > { %952 = vrcp.f32 %v761_v41 }
 0x4ac   : > { %v953_v42 = vpop.eup %952 }
 0x4ad   : > { %v763_v44 = vmul.f32 %v953_v42, %v747_v43 }
 0x4af   : > { %v764_v47 = vsub.f32 0.04, %v763_v44 }
 0x4b1   : > { %v765_v49 = vmax.f32 %v764_v47, 0.0 }
 0x4b3   : > { %v766_v51 = vsub.f32 0.04, %v765_v49 }
 0x4b5   : > { %v768_v52 = vadd.f32 %v767_v50, %v766_v51 }
 0x4b7   : > { %770 = vst.msk [vmem:[%s350_s13] sm:$0x1] %vm769_vm4, %v768_v52 }
 0x4b8 PF: > { %s17_s24 = sadd.s32 1, %s960_s24  }
 0x4b9   : > { %p14_p4 = scmp.ge.s32.totalorder %s17_s24, 4  }
 0x4bb   :  { %16 = sbr.rel (!%p14_p4) target bundleno = 1 (0x1), region = 93 }

</bundles_post_ra>
